<compile_context>
chip_gen: v6e
topology: v6e:2x2x1
jax: 0.10.0
libtpu: 0.0.40
codegen_flags: <defaults>
</compile_context>

<pallas_src>
import math
import functools

import jax
import jax.numpy as jnp
from jax import lax
from jax.experimental import pallas as pl
from jax.experimental.pallas import tpu as pltpu


# ----------------------------- Pallas kernels -----------------------------

def _qkv_proj_kernel(q_ref, k_ref, v_ref, w_ref, b_ref,
                     qo_ref, ko_ref, vo_ref, *, compute_dtype):
    """Fused Q/K/V projection for one row tile.

    q/k/v refs: [tn, D]; w_ref: [3, D, D] (q, k, v); b_ref: [3, D]; outputs [tn, D].
    The 1/sqrt(head_size) scale is already folded into w_ref[0] / b_ref[0].
    """
    def proj(x_ref, idx, o_ref):
        y = jnp.dot(x_ref[...].astype(compute_dtype),
                    w_ref[idx].astype(compute_dtype),
                    preferred_element_type=jnp.float32) + b_ref[idx]
        o_ref[...] = y.astype(o_ref.dtype)

    proj(q_ref, 0, qo_ref)
    proj(k_ref, 1, ko_ref)
    proj(v_ref, 2, vo_ref)


def _flash_mha_kernel(q_ref, k_ref, v_ref, bias_ref, wo_ref, bo_ref, o_ref,
                      m_ref, l_ref, acc_ref,
                      *, num_heads, head_size, compute_dtype):
    """Flash-style multi-head attention with fused output projection.

    q_ref:    [1, tq, D]  (D = H * hd, q already pre-scaled by 1/sqrt(hd) in the projection)
    k/v_ref:  [1, tk, D]
    bias_ref: [1, 1, tk]  additive mask bias (0 keep / -1e30 masked)
    wo_ref:   [D, D]      resident output-projection weight
    bo_ref:   [1, D]      resident output-projection bias
    o_ref:    [1, tq, D]  final projected output
    Scratch m/l/acc: [tq, D] f32 — per-head online-softmax state replicated across that
    head's hd lanes so the finalize is one lane-dense multiply before the MXU projection.
    """
    ki = pl.program_id(2)

    @pl.when(ki == 0)
    def _init():
        m_ref[...] = jnp.full_like(m_ref, -jnp.inf)
        l_ref[...] = jnp.zeros_like(l_ref)
        acc_ref[...] = jnp.zeros_like(acc_ref)

    q = q_ref[0].astype(compute_dtype)             # [tq, D]
    k = k_ref[0].astype(compute_dtype)             # [tk, D]
    v = v_ref[0].astype(compute_dtype)             # [tk, D]
    bias = bias_ref[0]                             # [1, tk]

    for h in range(num_heads):                     # static, unrolled
        sl = slice(h * head_size, (h + 1) * head_size)

        # scores: contract the head dims directly (no K transpose) -> [tq, tk]
        s = lax.dot_general(q[:, sl], k[:, sl],
                            (((1,), (1,)), ((), ())),
                            preferred_element_type=jnp.float32)
        s = s + bias                               # additive mask bias

        m_prev = m_ref[:, sl]                                   # [tq, hd] (equal cols)
        s_max = jnp.max(s, axis=-1, keepdims=True)              # [tq, 1]
        m_new = jnp.maximum(m_prev, s_max)                      # [tq, hd]
        alpha = jnp.exp(m_prev - m_new)                         # rescale factor
        p = jnp.exp(s - m_new[:, 0:1])                          # [tq, tk]

        l_ref[:, sl] = alpha * l_ref[:, sl] + jnp.sum(p, axis=-1, keepdims=True)
        acc_ref[:, sl] = alpha * acc_ref[:, sl] + lax.dot_general(
            p.astype(compute_dtype), v[:, sl],
            (((1,), (0,)), ((), ())),
            preferred_element_type=jnp.float32)
        m_ref[:, sl] = m_new

    @pl.when(ki == pl.num_programs(2) - 1)
    def _finalize():
        attn = acc_ref[...] * pl.reciprocal(l_ref[...], approx=True)   # [tq, D]
        out = jnp.dot(attn.astype(compute_dtype),
                      wo_ref[...].astype(compute_dtype),
                      preferred_element_type=jnp.float32) + bo_ref[...]
        o_ref[0] = out.astype(o_ref.dtype)


# ----------------------------- wrappers -----------------------------

def fused_qkv_projection(q, k, v, w_qkv, b_qkv, *, compute_dtype=jnp.float32,
                         tile_rows=512):
    """q/k/v: [N, D]; w_qkv: [3, D, D]; b_qkv: [3, D] -> (q_p, k_p, v_p) each [N, D]."""
    N, D = q.shape
    tn = min(tile_rows, N)
    row_in = pl.BlockSpec((tn, D), lambda i: (i, 0))
    row_out = pl.BlockSpec((tn, D), lambda i: (i, 0))
    sds = jax.ShapeDtypeStruct((N, D), q.dtype)
    return pl.pallas_call(
        functools.partial(_qkv_proj_kernel, compute_dtype=compute_dtype),
        grid=(pl.cdiv(N, tn),),
        out_shape=(sds, sds, sds),
        in_specs=[row_in, row_in, row_in,
                  pl.BlockSpec((3, D, D), lambda i: (0, 0, 0)),   # resident weights
                  pl.BlockSpec((3, D), lambda i: (0, 0))],        # resident biases
        out_specs=(row_out, row_out, row_out),
        compiler_params=pltpu.CompilerParams(dimension_semantics=("parallel",)),
    )(q, k, v, w_qkv, b_qkv)


def flash_mha(q, k, v, bias, w_o, b_o, *, num_heads, compute_dtype=jnp.float32,
              tile_q=128, tile_k=128):
    """q/k/v: [B, M, D]; bias: [B, 1, M] additive (0 keep / -1e30 masked);
    w_o: [D, D]; b_o: [1, D].  Returns the PROJECTED output [B, M, D]."""
    B, M, D = q.shape
    head_size = D // num_heads
    tq = min(tile_q, M)
    tk = min(tile_k, M)
    grid = (B, pl.cdiv(M, tq), pl.cdiv(M, tk))     # kv axis last (reduction)

    q_spec = pl.BlockSpec((1, tq, D), lambda b, qi, ki: (b, qi, 0))
    kv_spec = pl.BlockSpec((1, tk, D), lambda b, qi, ki: (b, ki, 0))
    bias_spec = pl.BlockSpec((1, 1, tk), lambda b, qi, ki: (b, 0, ki))
    wo_spec = pl.BlockSpec((D, D), lambda b, qi, ki: (0, 0))      # resident weight
    bo_spec = pl.BlockSpec((1, D), lambda b, qi, ki: (0, 0))      # resident bias

    return pl.pallas_call(
        functools.partial(_flash_mha_kernel, num_heads=num_heads,
                          head_size=head_size, compute_dtype=compute_dtype),
        grid=grid,
        out_shape=jax.ShapeDtypeStruct((B, M, D), q.dtype),
        in_specs=[q_spec, kv_spec, kv_spec, bias_spec, wo_spec, bo_spec],
        out_specs=q_spec,
        scratch_shapes=[pltpu.VMEM((tq, D), jnp.float32),   # m: running max
                        pltpu.VMEM((tq, D), jnp.float32),   # l: running denominator
                        pltpu.VMEM((tq, D), jnp.float32)],  # acc: unnormalized output
        compiler_params=pltpu.CompilerParams(
            dimension_semantics=("parallel", "parallel", "arbitrary")),
    )(q, k, v, bias, w_o, b_o)


def multi_headed_attention(params, k, v, q, mask=None, *, num_heads,
                           compute_dtype=jnp.float32):
    """Forward pass equivalent to MultiHeadedAttention.forward (eval mode).

    k, v, q: [B, M, D]; mask: optional [B, 1, M] (True/1 = keep).
    Softmax over the key axis (dim=-1), as intended by the OpenNMT module.
    """
    B, M, D = k.shape
    N = B * M
    head_size = D // num_heads
    scale = 1.0 / math.sqrt(head_size)

    # Stack projection weights (tiny, [3, D, D]) so all three projections run in one call.
    # Fold the 1/sqrt(head_size) scale into the q projection (one-time op on weights).
    w_qkv = jnp.stack([params["wq"] * scale, params["wk"], params["wv"]])
    b_qkv = jnp.stack([params["bq"] * scale, params["bk"], params["bv"]])

    q_p, k_p, v_p = fused_qkv_projection(
        q.reshape(N, D), k.reshape(N, D), v.reshape(N, D),
        w_qkv, b_qkv, compute_dtype=compute_dtype)

    if mask is None:
        bias = jnp.zeros((B, 1, M), jnp.float32)
    else:
        # additive mask bias: finite -1e30 (avoids NaN for fully-masked rows)
        bias = jnp.where(mask.astype(bool), 0.0, -1e30).astype(jnp.float32)

    # Flash attention with the output projection fused into its finalize step.
    out = flash_mha(q_p.reshape(B, M, D), k_p.reshape(B, M, D),
                    v_p.reshape(B, M, D), bias,
                    params["wo"], params["bo"].reshape(1, D),
                    num_heads=num_heads, compute_dtype=compute_dtype)   # [B, M, D]
    return out


# ----------------------------- reference (pure JAX) -----------------------------

def reference_mha(params, k, v, q, mask, *, num_heads):
    B, M, D = k.shape
    hd = D // num_heads
    kp = k @ params["wk"] + params["bk"]
    vp = v @ params["wv"] + params["bv"]
    qp = q @ params["wq"] + params["bq"]
    to_h = lambda x: x.reshape(B, M, num_heads, hd).transpose(0, 2, 1, 3)
    kh, vh, qh = to_h(kp), to_h(vp), to_h(qp)
    qh = qh / math.sqrt(hd)
    scores = jnp.einsum("bhqd,bhkd->bhqk", qh, kh)
    if mask is not None:
        scores = jnp.where(mask[:, None, :, :], scores, -jnp.inf)
    alpha = jax.nn.softmax(scores, axis=-1)
    attn = jnp.einsum("bhqk,bhkd->bhqd", alpha, vh)
    attn = attn.transpose(0, 2, 1, 3).reshape(B, M, D)
    return attn @ params["wo"] + params["bo"]


# ----------------------------- main -----------------------------

if __name__ == "__main__":
    B, M, D, H = 2, 8, 32, 4   # batch, seq len, model size, num heads
    key = jax.random.PRNGKey(0)
    ks = jax.random.split(key, 12)

    # Deterministic synthetic parameters (nn.Linear weights stored transposed [in, out]).
    scale = 1.0 / math.sqrt(D)
    params = {
        "wq": jax.random.uniform(ks[0], (D, D), jnp.float32, -scale, scale),
        "bq": jax.random.uniform(ks[1], (D,), jnp.float32, -scale, scale),
        "wk": jax.random.uniform(ks[2], (D, D), jnp.float32, -scale, scale),
        "bk": jax.random.uniform(ks[3], (D,), jnp.float32, -scale, scale),
        "wv": jax.random.uniform(ks[4], (D, D), jnp.float32, -scale, scale),
        "bv": jax.random.uniform(ks[5], (D,), jnp.float32, -scale, scale),
        "wo": jax.random.uniform(ks[6], (D, D), jnp.float32, -scale, scale),
        "bo": jax.random.uniform(ks[7], (D,), jnp.float32, -scale, scale),
    }

    k_in = jax.random.normal(ks[8], (B, M, D), jnp.float32)
    v_in = jax.random.normal(ks[9], (B, M, D), jnp.float32)
    q_in = jax.random.normal(ks[10], (B, M, D), jnp.float32)

    # padding-style mask [B, 1, M]: valid lengths 8 and 5
    lengths = jnp.array([8, 5])
    mask = (jnp.arange(M)[None, None, :] < lengths[:, None, None])   # bool [B, 1, M]

    out = multi_headed_attention(params, k_in, v_in, q_in, mask, num_heads=H)
    out = jax.block_until_ready(out)

    ref = reference_mha(params, k_in, v_in, q_in, mask, num_heads=H)
    assert out.shape == (B, M, D)
    # tolerance covers the EUP approximate reciprocal used for the softmax denominator
    assert jnp.allclose(out, ref, atol=5e-3, rtol=5e-3), "mismatch vs reference"

    print("KERNEL_OK")
</pallas_src>

<mosaic_0001>
module attributes {stable_mosaic.version = 11 : i64} {
  func.func @_qkv_proj_kernel(%arg0: i32, %arg1: memref<16x32xf32, #tpu.memory_space<vmem>>, %arg2: memref<16x32xf32, #tpu.memory_space<vmem>>, %arg3: memref<16x32xf32, #tpu.memory_space<vmem>>, %arg4: memref<3x32x32xf32, #tpu.memory_space<vmem>>, %arg5: memref<3x32xf32, #tpu.memory_space<vmem>>, %arg6: memref<16x32xf32, #tpu.memory_space<vmem>>, %arg7: memref<16x32xf32, #tpu.memory_space<vmem>>, %arg8: memref<16x32xf32, #tpu.memory_space<vmem>>) attributes {dimension_semantics = [#tpu.dimension_semantics<parallel>], iteration_bounds = array<i64: 1>, scalar_prefetch = 0 : i64, scratch_operands = 0 : i64, tpu.core_type = #tpu.core_type<tc>, window_params = [{transform_indices = @transform_0, window_bounds = array<i64: 16, 32>}, {transform_indices = @transform_1, window_bounds = array<i64: 16, 32>}, {transform_indices = @transform_2, window_bounds = array<i64: 16, 32>}, {pipeline_mode = #tpu.pipeline_mode<synchronous>, transform_indices = @transform_3, window_bounds = array<i64: 3, 32, 32>}, {pipeline_mode = #tpu.pipeline_mode<synchronous>, transform_indices = @transform_4, window_bounds = array<i64: 3, 32>}, {transform_indices = @transform_5, window_bounds = array<i64: 16, 32>}, {transform_indices = @transform_6, window_bounds = array<i64: 16, 32>}, {transform_indices = @transform_7, window_bounds = array<i64: 16, 32>}]} {
    %c0 = arith.constant 0 : index
    %c0_0 = arith.constant 0 : index
    %0 = vector.load %arg1[%c0, %c0_0] : memref<16x32xf32, #tpu.memory_space<vmem>>, vector<16x32xf32>
    %c0_1 = arith.constant 0 : index
    %c0_2 = arith.constant 0 : index
    %c0_3 = arith.constant 0 : index
    %1 = vector.load %arg4[%c0_1, %c0_2, %c0_3] : memref<3x32x32xf32, #tpu.memory_space<vmem>>, vector<1x32x32xf32>
    %2 = vector.shape_cast %1 : vector<1x32x32xf32> to vector<32x32xf32>
    %cst = arith.constant dense<0.000000e+00> : vector<16x32xf32>
    %3 = tpu.matmul %0, %2, %cst {dimension_numbers = #tpu.dot_dimension_numbers<[1], [0], [0], [1], [0, 0, 1, 1], [], []>} : vector<16x32xf32>, vector<32x32xf32>, vector<16x32xf32> -> vector<16x32xf32>
    %c0_4 = arith.constant 0 : index
    %c0_5 = arith.constant 0 : index
    %4 = vector.load %arg5[%c0_4, %c0_5] : memref<3x32xf32, #tpu.memory_space<vmem>>, vector<1x32xf32>
    %5 = vector.shape_cast %4 : vector<1x32xf32> to vector<32xf32>
    %6 = vector.shape_cast %5 : vector<32xf32> to vector<1x32xf32>
    %7 = vector.broadcast %6 : vector<1x32xf32> to vector<16x32xf32>
    %8 = arith.addf %3, %7 : vector<16x32xf32>
    %c0_6 = arith.constant 0 : index
    %c0_7 = arith.constant 0 : index
    %9 = vector.load %arg6[%c0_6, %c0_7] : memref<16x32xf32, #tpu.memory_space<vmem>>, vector<16x32xf32>
    tpu.vector_store %arg6[%c0_6, %c0_7], %8 {strides = array<i32>} : memref<16x32xf32, #tpu.memory_space<vmem>>, vector<16x32xf32>,
    %c0_8 = arith.constant 0 : index
    %c0_9 = arith.constant 0 : index
    %10 = vector.load %arg2[%c0_8, %c0_9] : memref<16x32xf32, #tpu.memory_space<vmem>>, vector<16x32xf32>
    %c1 = arith.constant 1 : index
    %c0_10 = arith.constant 0 : index
    %c0_11 = arith.constant 0 : index
    %11 = vector.load %arg4[%c1, %c0_10, %c0_11] : memref<3x32x32xf32, #tpu.memory_space<vmem>>, vector<1x32x32xf32>
    %12 = vector.shape_cast %11 : vector<1x32x32xf32> to vector<32x32xf32>
    %cst_12 = arith.constant dense<0.000000e+00> : vector<16x32xf32>
    %13 = tpu.matmul %10, %12, %cst_12 {dimension_numbers = #tpu.dot_dimension_numbers<[1], [0], [0], [1], [0, 0, 1, 1], [], []>} : vector<16x32xf32>, vector<32x32xf32>, vector<16x32xf32> -> vector<16x32xf32>
    %c1_13 = arith.constant 1 : index
    %c0_14 = arith.constant 0 : index
    %14 = vector.load %arg5[%c1_13, %c0_14] : memref<3x32xf32, #tpu.memory_space<vmem>>, vector<1x32xf32>
    %15 = vector.shape_cast %14 : vector<1x32xf32> to vector<32xf32>
    %16 = vector.shape_cast %15 : vector<32xf32> to vector<1x32xf32>
    %17 = vector.broadcast %16 : vector<1x32xf32> to vector<16x32xf32>
    %18 = arith.addf %13, %17 : vector<16x32xf32>
    %c0_15 = arith.constant 0 : index
    %c0_16 = arith.constant 0 : index
    %19 = vector.load %arg7[%c0_15, %c0_16] : memref<16x32xf32, #tpu.memory_space<vmem>>, vector<16x32xf32>
    tpu.vector_store %arg7[%c0_15, %c0_16], %18 {strides = array<i32>} : memref<16x32xf32, #tpu.memory_space<vmem>>, vector<16x32xf32>,
    %c0_17 = arith.constant 0 : index
    %c0_18 = arith.constant 0 : index
    %20 = vector.load %arg3[%c0_17, %c0_18] : memref<16x32xf32, #tpu.memory_space<vmem>>, vector<16x32xf32>
    %c2 = arith.constant 2 : index
    %c0_19 = arith.constant 0 : index
    %c0_20 = arith.constant 0 : index
    %21 = vector.load %arg4[%c2, %c0_19, %c0_20] : memref<3x32x32xf32, #tpu.memory_space<vmem>>, vector<1x32x32xf32>
    %22 = vector.shape_cast %21 : vector<1x32x32xf32> to vector<32x32xf32>
    %cst_21 = arith.constant dense<0.000000e+00> : vector<16x32xf32>
    %23 = tpu.matmul %20, %22, %cst_21 {dimension_numbers = #tpu.dot_dimension_numbers<[1], [0], [0], [1], [0, 0, 1, 1], [], []>} : vector<16x32xf32>, vector<32x32xf32>, vector<16x32xf32> -> vector<16x32xf32>
    %c2_22 = arith.constant 2 : index
    %c0_23 = arith.constant 0 : index
    %24 = vector.load %arg5[%c2_22, %c0_23] : memref<3x32xf32, #tpu.memory_space<vmem>>, vector<1x32xf32>
    %25 = vector.shape_cast %24 : vector<1x32xf32> to vector<32xf32>
    %26 = vector.shape_cast %25 : vector<32xf32> to vector<1x32xf32>
    %27 = vector.broadcast %26 : vector<1x32xf32> to vector<16x32xf32>
    %28 = arith.addf %23, %27 : vector<16x32xf32>
    %c0_24 = arith.constant 0 : index
    %c0_25 = arith.constant 0 : index
    %29 = vector.load %arg8[%c0_24, %c0_25] : memref<16x32xf32, #tpu.memory_space<vmem>>, vector<16x32xf32>
    tpu.vector_store %arg8[%c0_24, %c0_25], %28 {strides = array<i32>} : memref<16x32xf32, #tpu.memory_space<vmem>>, vector<16x32xf32>,
    return
  }
  func.func @transform_0(%arg0: i32) -> (i32, i32) {
    %c0_i32 = arith.constant 0 : i32
    %c0_i32_0 = arith.constant 0 : i32
    return %arg0, %c0_i32 : i32, i32
  }
  func.func @transform_1(%arg0: i32) -> (i32, i32) {
    %c0_i32 = arith.constant 0 : i32
    %c0_i32_0 = arith.constant 0 : i32
    return %arg0, %c0_i32 : i32, i32
  }
  func.func @transform_2(%arg0: i32) -> (i32, i32) {
    %c0_i32 = arith.constant 0 : i32
    %c0_i32_0 = arith.constant 0 : i32
    return %arg0, %c0_i32 : i32, i32
  }
  func.func @transform_3(%arg0: i32) -> (i32, i32, i32) {
    %c0_i32 = arith.constant 0 : i32
    %c0_i32_0 = arith.constant 0 : i32
    %c0_i32_1 = arith.constant 0 : i32
    %c0_i32_2 = arith.constant 0 : i32
    return %c0_i32, %c0_i32_0, %c0_i32_1 : i32, i32, i32
  }
  func.func @transform_4(%arg0: i32) -> (i32, i32) {
    %c0_i32 = arith.constant 0 : i32
    %c0_i32_0 = arith.constant 0 : i32
    %c0_i32_1 = arith.constant 0 : i32
    return %c0_i32, %c0_i32_0 : i32, i32
  }
  func.func @transform_5(%arg0: i32) -> (i32, i32) {
    %c0_i32 = arith.constant 0 : i32
    %c0_i32_0 = arith.constant 0 : i32
    return %arg0, %c0_i32 : i32, i32
  }
  func.func @transform_6(%arg0: i32) -> (i32, i32) {
    %c0_i32 = arith.constant 0 : i32
    %c0_i32_0 = arith.constant 0 : i32
    return %arg0, %c0_i32 : i32, i32
  }
  func.func @transform_7(%arg0: i32) -> (i32, i32) {
    %c0_i32 = arith.constant 0 : i32
    %c0_i32_0 = arith.constant 0 : i32
    return %arg0, %c0_i32 : i32, i32
  }
}

</mosaic_0001>

<bundles_post_ra>
// kernel: tpu_custom_call.1
= control target key start
LH: loop header
LB: loop body
LE: loop exit
PB: predicated region body
PF: predicated region fallthrough
CT: control target
= control target key end

     0   :  { %13 = vsyncpa [#allocation3], 0  ;;  %s746_s0 = inlined_call_operand.hbm [shape: f32[16,32], index: 0, kind: input, shape index: {}]   ;;  %s747_s1 = inlined_call_operand.hbm [shape: f32[16,32], index: 1, kind: input, shape index: {}]   ;;  %s748_s2 = inlined_call_operand.hbm [shape: f32[16,32], index: 2, kind: input, shape index: {}]   ;;  %s749_s3 = inlined_call_operand.hbm [shape: f32[3,32,32], index: 3, kind: input, shape index: {}]   ;;  %s750_s4 = inlined_call_operand.vmem [shape: f32[3,32], index: 4, kind: input, shape index: {}]   ;;  %s751_s5 = inlined_call_operand.hbm [shape: f32[16,32], index: 5, kind: output, shape index: {0}]   ;;  %s752_s6 = inlined_call_operand.hbm [shape: f32[16,32], index: 6, kind: output, shape index: {1}]   ;;  %s753_s7 = inlined_call_operand.hbm [shape: f32[16,32], index: 7, kind: output, shape index: {2}]  }
   0x1   :  { %14 = vsyncpa [#allocation6], 0 }
   0x2   :  { %15 = vsyncpa [#allocation9], 0 }
   0x3   :  { %16 = vsyncpa [#allocation4], 0 }
   0x4   :  { %17 = vsyncpa [#allocation12], 0  ;;  %s634_s24 = smov [#allocation5]   ;;  %s635_s26 = smov [#allocation2]  }
   0x5   :  { %s35_s25 = sshll.u32 %s634_s24, 4  ;;  %s23_s27 = sshll.u32 %s635_s26, 4  ;;  %s36_s25 = int_to_ptr.vmem [resolvable:$true] %s35_s25  ;;  %s24_s27 = int_to_ptr.vmem [resolvable:$true] %s23_s27 }
   0x6   :  { %s492_s28 = scalar_lea.vmem %s36_s25, 256  ;;  %p497_p1 = scmp.lt.s32.totalorder %s36_s25, %s36_s25 }
   0x7   :  { %p493_p0 = scmp.ne.s32.totalorder %s36_s25, %s492_s28  ;;  %p498_p2 = scmp.lt.s32.totalorder %s492_s28, %s492_s28 }
   0x9   :  { %p499_p3 = por %p498_p2, %p497_p1 }
   0xb   :  { %p500_p4 = pnand %p499_p3, %p493_p0 }
   0xd   :  { %503 = shalt.err (!%p500_p4)
}
   0xe   :  { %s636_s29 = smov 128   ;;  %s637_s30 = smov 8  }
   0xf   :  { %41 = dma.hbm_to_vmem [thread:$0]  %s747_s1, 256, %s36_s25, [#allocation6], %s636_s29, %s636_s29, %s637_s30  }
  0x10   :  { %s512_s10 = scalar_lea.vmem %s24_s27, 256  ;;  %p517_p6 = scmp.lt.s32.totalorder %s24_s27, %s24_s27 }
  0x11   :  { %p513_p5 = scmp.ne.s32.totalorder %s24_s27, %s512_s10  ;;  %p518_p7 = scmp.lt.s32.totalorder %s512_s10, %s512_s10 }
  0x13   :  { %p519_p8 = por %p518_p7, %p517_p6 }
  0x15   :  { %p520_p9 = pnand %p519_p8, %p513_p5 }
  0x17   :  { %523 = shalt.err (!%p520_p9)
}
  0x18   :  { %29 = dma.hbm_to_vmem [thread:$0]  %s746_s0, 256, %s24_s27, [#allocation3], %s636_s29, %s636_s29, %s637_s30  }
  0x19   :  { %s638_s13 = smov [#allocation7]   ;;  %s639_s15 = smov [#allocation8]  }
  0x1a   :  { %s47_s14 = sshll.u32 %s638_s13, 4  ;;  %s59_s16 = sshll.u32 %s639_s15, 4  ;;  %s48_s14 = int_to_ptr.vmem [resolvable:$true] %s47_s14  ;;  %s60_s16 = int_to_ptr.vmem [resolvable:$true] %s59_s16 }
  0x1b   :  { %s532_s1 = scalar_lea.vmem %s48_s14, 256  ;;  %p537_p11 = scmp.lt.s32.totalorder %s48_s14, %s48_s14 }
  0x1c   :  { %p533_p10 = scmp.ne.s32.totalorder %s48_s14, %s532_s1  ;;  %p538_p12 = scmp.lt.s32.totalorder %s532_s1, %s532_s1 }
  0x1e   :  { %p539_p13 = por %p538_p12, %p537_p11 }
  0x20   :  { %p540_p0 = pnand %p539_p13, %p533_p10 }
  0x22   :  { %543 = shalt.err (!%p540_p0)
}
  0x23   :  { %53 = dma.hbm_to_vmem [thread:$0]  %s748_s2, 256, %s48_s14, [#allocation6], %s636_s29, %s636_s29, %s637_s30  }
  0x24   :  { %s552_s0 = scalar_lea.vmem %s60_s16, 1536  ;;  %p557_p2 = scmp.lt.s32.totalorder %s60_s16, %s60_s16 }
  0x25   :  { %p553_p1 = scmp.ne.s32.totalorder %s60_s16, %s552_s0  ;;  %p558_p3 = scmp.lt.s32.totalorder %s552_s0, %s552_s0 }
  0x27   :  { %p559_p4 = por %p558_p3, %p557_p2 }
  0x29   :  { %p560_p5 = pnand %p559_p4, %p553_p1 }
  0x2b   :  { %563 = shalt.err (!%p560_p5)
}
  0x2c   :  { %65 = dma.hbm_to_vmem [thread:$0]  %s749_s3, 1536, %s60_s16, [#allocation9], %s636_s29, %s636_s29, %s637_s30  }
  0x2d   :  { %624 = dma.done.wait [#allocation3], 256  }
  0x2e   :  { %625 = vsyncadd [#allocation3], 4294967040 }
  0x2f   :  { %626 = dma.done.wait [#allocation6], 512  }
  0x30   :  { %627 = vsyncadd [#allocation6], 4294966784 }
  0x31   :  { %628 = dma.done.wait [#allocation9], 1536  }
  0x32   :  { %629 = vsyncadd [#allocation9], 4294965760  ;;  %v85_v0 = vld [vmem:[#allocation8 + $0x18] sm:$0xff]  ;;  %v84_v1 = vld [vmem:[#allocation8 + $0x10] sm:$0xff]  ;;  %vm91_vm0 = vcmask 261120   ;;  %s640_s21 = smov [#allocation10]  }
  0x33   :  { %442 = vmatprep.subr.mxu0 %v85_v0  ;;  %v181_v2 = vld [vmem:[#allocation8 + $0x38] sm:$0xff]  ;;  %v80_v3 = vld [vmem:[#allocation2] sm:$0xff]  ;;  %v83_v4 = vld [vmem:[#allocation8 + $0x8] sm:$0xff]  ;;  %s370_s22 = sshll.u32 %s640_s21, 4  ;;  %s641_s25 = smov [#allocation11]   ;;  %s371_s22 = int_to_ptr.vmem [resolvable:$true] %s370_s22 }
  0x34   :  { %443 = vmatpush3.msra.mxu0 %v85_v0  ;;  %453 = vmatprep.subr.mxu1 %v181_v2  ;;  %v180_v5 = vld [vmem:[#allocation8 + $0x30] sm:$0xff]  ;;  %v82_v6 = vld [vmem:[#allocation8] sm:$0xff]  ;;  %v179_v7 = vld [vmem:[#allocation8 + $0x28] sm:$0xff]  ;;  %s382_s26 = sshll.u32 %s641_s25, 4  ;;  %s564_s8 = scalar_lea.vmem %s371_s22, 256  ;;  %s383_s26 = int_to_ptr.vmem [resolvable:$true] %s382_s26 }
  0x35   :  { %444 = vmatprep.subr.mxu0 %v84_v1  ;;  %454 = vmatpush3.msra.mxu1 %v181_v2  ;;  %v81_v8 = vld [vmem:[#allocation2 + $0x8] sm:$0xff]  ;;  %v178_v10 = vld [vmem:[#allocation8 + $0x20] sm:$0xff]  ;;  %v275_v11 = vld [vmem:[#allocation8 + $0x50] sm:$0xff]  ;;  %p565_p6 = scmp.ne.s32.totalorder %s371_s22, %s564_s8  ;;  %p569_p7 = scmp.lt.s32.totalorder %s371_s22, %s371_s22 }
  0x36   :  { %445 = vmatpush3.msra.mxu0 %v84_v1  ;;  %450 = vmatprep.mubr.msk.f32.mxu0 %vm91_vm0, %v80_v3  ;;  %v276_v9 = vld [vmem:[#allocation8 + $0x58] sm:$0xff]  ;;  %v175_v12 = vld [vmem:[#allocation5] sm:$0xff]  ;;  %v274_v13 = vld [vmem:[#allocation8 + $0x48] sm:$0xff]  ;;  %p570_p8 = scmp.lt.s32.totalorder %s564_s8, %s564_s8 }
  0x37   :  { %446 = vmatprep.subr.mxu0 %v83_v4  ;;  %455 = vmatprep.subr.mxu1 %v180_v5  ;;  %v176_v14 = vld [vmem:[#allocation5 + $0x8] sm:$0xff]  ;;  %v270_v15 = vld [vmem:[#allocation7] sm:$0xff]  ;;  %v273_v16 = vld [vmem:[#allocation8 + $0x40] sm:$0xff] }
  0x38   :  { %447 = vmatpush3.msra.mxu0 %v83_v4  ;;  %456 = vmatpush3.msra.mxu1 %v180_v5  ;;  %v271_v17 = vld [vmem:[#allocation7 + $0x8] sm:$0xff]  ;;  %v415_v18 = vld [vmem:[%s750_s4] ss:$0 sm:$0xff]  ;;  %v418_v22 = vld [vmem:[%s750_s4 + $0x1] ss:$0 sm:$0xff]  ;;  %p571_p9 = por %p570_p8, %p569_p7 }
  0x39   :  { %448 = vmatprep.subr.mxu0 %v82_v6  ;;  %457 = vmatprep.subr.mxu1 %v179_v7  ;;  %v421_v26 = vld [vmem:[%s750_s4 + $0x2] ss:$0 sm:$0xff] }
  0x3a   :  { %449 = vmatpush3.msra.mxu0 %v82_v6  ;;  %458 = vmatpush3.msra.mxu1 %v179_v7  ;;  %p572_p10 = pnand %p571_p9, %p565_p6 }
  0x3b   :  { %451 = vmatmul.mubr.msk.f32.vlgmr.msra.gmra.mxu0 %vm91_vm0, %v81_v8  ;;  %464 = vmatprep.subr.mxu0 %v276_v9 }
  0x3c   :  { %465 = vmatpush3.msra.mxu0 %v276_v9  ;;  %459 = vmatprep.subr.mxu1 %v178_v10 }
  0x3d   :  { %466 = vmatprep.subr.mxu0 %v275_v11  ;;  %460 = vmatpush3.msra.mxu1 %v178_v10 }
  0x3e   :  { %467 = vmatpush3.msra.mxu0 %v275_v11  ;;  %461 = vmatprep.mubr.msk.f32.mxu1 %vm91_vm0, %v175_v12 }
  0x3f   :  { %468 = vmatprep.subr.mxu0 %v274_v13  ;;  %462 = vmatmul.mubr.msk.f32.vlgmr.msra.gmra.mxu1 %vm91_vm0, %v176_v14 }
  0x40   :  { %469 = vmatpush3.msra.mxu0 %v274_v13  ;;  %472 = vmatprep.mubr.msk.f32.mxu0 %vm91_vm0, %v270_v15 }
  0x41   :  { %470 = vmatprep.subr.mxu0 %v273_v16 }
  0x42   :  { %471 = vmatpush3.msra.mxu0 %v273_v16 }
  0x43   :  { %473 = vmatmul.mubr.msk.f32.vlgmr.msra.gmra.mxu0 %vm91_vm0, %v271_v17 }
  0xfb   :  { %v452_v19 = vpop.f32.mrf.mxu0 }
  0xfc   :  { %v170_v20 = vadd.f32 %v452_v19, %v415_v18 }
  0xfd   :  { %v164_v21 = vpop.f32.mrf.mxu0 }
  0xfe   :  { %174 = vst.msk [vmem:[#allocation10 + $0x8] sm:$0xff] %vm91_vm0, %v170_v20  ;;  %v165_v23 = vadd.f32 %v415_v18, %v164_v21 }
  0xff   :  { %v463_v24 = vpop.f32.mrf.mxu1 }
 0x100   :  { %173 = vst.msk [vmem:[#allocation10] sm:$0xff] %vm91_vm0, %v165_v23  ;;  %v265_v25 = vadd.f32 %v463_v24, %v418_v22 }
 0x101   :  { %v259_v27 = vpop.f32.mrf.mxu1 }
 0x102   :  { %575 = shalt.err (!%p572_p10)
}
 0x103   :  { %376 = dma.vmem_to_hbm [thread:$0]  %s371_s22, 256, %s751_s5, [#allocation4], %s636_s29, %s636_s29, %s637_s30   ;;  %269 = vst.msk [vmem:[#allocation11 + $0x8] sm:$0xff] %vm91_vm0, %v265_v25  ;;  %v260_v28 = vadd.f32 %v418_v22, %v259_v27  ;;  %v474_v29 = vpop.f32.mrf.mxu0 }
 0x104   :  { %s642_s4 = smov [#allocation13]   ;;  %v360_v30 = vadd.f32 %v474_v29, %v421_v26  ;;  %s584_s12 = scalar_lea.vmem %s383_s26, 256 }
 0x105   :  { %s394_s11 = sshll.u32 %s642_s4, 4  ;;  %268 = vst.msk [vmem:[#allocation11] sm:$0xff] %vm91_vm0, %v260_v28  ;;  %v354_v31 = vpop.f32.mrf.mxu0  ;;  %p585_p11 = scmp.ne.s32.totalorder %s383_s26, %s584_s12  ;;  %s395_s11 = int_to_ptr.vmem [resolvable:$true] %s394_s11 }
 0x106   :  { %p589_p12 = scmp.lt.s32.totalorder %s383_s26, %s383_s26  ;;  %p590_p13 = scmp.lt.s32.totalorder %s584_s12, %s584_s12 }
 0x108   :  { %p591_p0 = por %p590_p13, %p589_p12 }
 0x10a   :  { %p592_p1 = pnand %p591_p0, %p585_p11 }
 0x10c   :  { %595 = shalt.err (!%p592_p1)
}
 0x10d   :  { %388 = dma.vmem_to_hbm [thread:$0]  %s383_s26, 256, %s752_s6, [#allocation12], %s636_s29, %s636_s29, %s637_s30   ;;  %364 = vst.msk [vmem:[#allocation13 + $0x8] sm:$0xff] %vm91_vm0, %v360_v30  ;;  %v355_v32 = vadd.f32 %v421_v26, %v354_v31 }
 0x10e   :  { %s604_s14 = scalar_lea.vmem %s395_s11, 256  ;;  %p609_p3 = scmp.lt.s32.totalorder %s395_s11, %s395_s11 }
 0x10f   :  { %363 = vst.msk [vmem:[#allocation13] sm:$0xff] %vm91_vm0, %v355_v32  ;;  %p605_p2 = scmp.ne.s32.totalorder %s395_s11, %s604_s14  ;;  %p610_p4 = scmp.lt.s32.totalorder %s604_s14, %s604_s14 }
 0x111   :  { %p611_p5 = por %p610_p4, %p609_p3 }
 0x113   :  { %p612_p6 = pnand %p611_p5, %p605_p2 }
 0x115   :  { %615 = shalt.err (!%p612_p6)
}
 0x116   :  { %400 = dma.vmem_to_hbm [thread:$0]  %s395_s11, 256, %s753_s7, [#allocation12], %s636_s29, %s636_s29, %s637_s30  }
 0x117   :  { %630 = dma.done.wait [#allocation4], 256  }
 0x118   :  { %631 = vsyncadd [#allocation4], 4294967040 }
 0x119   :  { %632 = dma.done.wait [#allocation12], 512  }
 0x11a   :  { %633 = vsyncadd [#allocation12], 4294966784 }
 0x11b   :  { %410 = vsyncpa [#allocation3], 1 }
 0x11c   :  { %411 = vsyncpa [#allocation6], 1 }
 0x11d   :  { %412 = vsyncpa [#allocation9], 1 }
 0x11e   :  { %413 = vsyncpa [#allocation4], 1 }
 0x11f   :  { %414 = vsyncpa [#allocation12], 1 }

</bundles_post_ra>
